<compile_context>
chip_gen: v7x
topology: tpu7x:2x2x1
jax: 0.10.0
libtpu: 0.0.40
codegen_flags: <defaults>
</compile_context>

<pallas_src>
import jax
import jax.numpy as jnp
from jax.experimental import pallas as pl
from jax.experimental.pallas import tpu as pltpu


def _rbf_kernel(x_ref, ct_ref, c2_ref, nbeta_ref, w_ref, b_ref, out_ref):
    # x_ref:     (tB, D)  batch tile of samples
    # ct_ref:    (D,  C)  centers, pre-transposed (lane-dense on C)
    # c2_ref:    (1,  C)  per-center squared L2 norms
    # nbeta_ref: (1,  C)  -beta (negation hoisted to wrapper)
    # w_ref:     (1,  C)  Linear weight row
    # b_ref:     (1,  1)  Linear bias (SMEM)
    # out_ref:   (tB, 1)
    x = x_ref[...]                                                       # (tB, D)
    # ||x - c||^2 = ||x||^2 - 2 x.c + ||c||^2 ; x.c is an MXU matmul.
    xc = jnp.dot(x, ct_ref[...], preferred_element_type=jnp.float32)     # (tB, C)
    x2 = jnp.sum(x * x, axis=-1, keepdims=True)                          # (tB, 1)
    d2 = jnp.maximum(x2 - 2.0 * xc + c2_ref[...], 0.0)                   # (tB, C)
    dist = jnp.sqrt(d2)                                                  # torch.norm(x - c_i)
    hidden = jnp.exp(nbeta_ref[...] * dist)                              # (tB, C), EUP
    # torch.where(isinf(hidden), 0, hidden) — kept for exact semantics
    # (only reachable if beta < 0).
    hidden = jnp.where(jnp.isinf(hidden), jnp.zeros_like(hidden), hidden)
    # Linear(num_centers, 1): lane-axis reduce of hidden * W, plus bias scalar.
    out_ref[...] = jnp.sum(hidden * w_ref[...], axis=-1, keepdims=True) + b_ref[0, 0]


def rbf_forward(x, centers, beta, weight, bias, *, block_b=8):
    """x: (B, D) or (D,); centers: (C, D); beta: (C,); weight: (1, C); bias: (1,).

    Returns (B, 1) for batched input, (1,) for a single sample (matches the
    torch module's single-sample forward).
    """
    squeeze = x.ndim == 1
    xb = (x.reshape(1, -1) if squeeze else x).astype(jnp.float32)
    B, D = xb.shape
    C, Dc = centers.shape
    assert D == Dc, (D, Dc)

    centers = centers.astype(jnp.float32)
    centers_t = centers.T                                       # (D, C)
    c2 = jnp.sum(centers * centers, axis=-1).reshape(1, C)      # (1, C)
    neg_beta = (-beta).reshape(1, C).astype(jnp.float32)        # (1, C)
    w_row = weight.reshape(1, C).astype(jnp.float32)            # (1, C)
    b2 = bias.reshape(1, 1).astype(jnp.float32)                 # (1, 1) -> SMEM

    # Pad the batch to a multiple of the batch tile (sublane-aligned tiles).
    num_tiles = pl.cdiv(B, block_b)
    b_pad = num_tiles * block_b
    if b_pad != B:
        xb = jnp.pad(xb, ((0, b_pad - B), (0, 0)))

    out = pl.pallas_call(
        _rbf_kernel,
        out_shape=jax.ShapeDtypeStruct((b_pad, 1), jnp.float32),
        grid=(num_tiles,),
        in_specs=[
            pl.BlockSpec((block_b, D), lambda i: (i, 0)),         # x batch tile
            pl.BlockSpec((D, C), lambda i: (0, 0)),               # centers^T (resident)
            pl.BlockSpec((1, C), lambda i: (0, 0)),               # ||c||^2   (resident)
            pl.BlockSpec((1, C), lambda i: (0, 0)),               # -beta     (resident)
            pl.BlockSpec((1, C), lambda i: (0, 0)),               # W row     (resident)
            pl.BlockSpec(memory_space=pltpu.MemorySpace.SMEM),    # bias scalar
        ],
        out_specs=pl.BlockSpec((block_b, 1), lambda i: (i, 0)),
        compiler_params=pltpu.CompilerParams(
            dimension_semantics=("parallel",)),                   # megacore on v7x
    )(xb, centers_t, c2, neg_beta, w_row, b2)

    out = out[:B]
    return out[0] if squeeze else out


if __name__ == "__main__":
    key = jax.random.PRNGKey(0)
    k_centers, k_x, k_w, k_b = jax.random.split(key, 4)

    num_centers = 8        # C
    data_dim = 128         # D  (n_dim = data_dim - 1 = 127, unused in forward)
    batch = 16             # B  (amortizes pallas_call fixed overhead)

    centers = jax.random.normal(k_centers, (num_centers, data_dim), dtype=jnp.float32)
    x = jax.random.normal(k_x, (batch, data_dim), dtype=jnp.float32)

    # Parameters (same init as the torch module):
    beta = jnp.ones((num_centers,), dtype=jnp.float32) / 2.0
    bound = 1.0 / jnp.sqrt(jnp.float32(num_centers))
    weight = jax.random.uniform(k_w, (1, num_centers), jnp.float32, -bound, bound)
    bias = jax.random.uniform(k_b, (1,), jnp.float32, -bound, bound)

    out = rbf_forward(x, centers, beta, weight, bias)
    jax.block_until_ready(out)

    # Pure-JAX reference (exact per-sample math of the torch forward loop).
    dist = jnp.sqrt(jnp.sum((x[:, None, :] - centers[None, :, :]) ** 2, axis=-1))  # (B, C)
    hidden = jnp.exp(-beta[None, :] * dist)
    hidden = jnp.where(jnp.isinf(hidden), 0.0, hidden)
    ref = (hidden @ weight[0] + bias).reshape(batch, 1)

    assert out.shape == (batch, 1), out.shape
    assert jnp.allclose(out, ref, rtol=1e-4, atol=1e-4), (out, ref)

    # Single-sample path (the original module's exact calling convention).
    out1 = rbf_forward(x[0], centers, beta, weight, bias)
    jax.block_until_ready(out1)
    assert out1.shape == (1,), out1.shape
    assert jnp.allclose(out1, ref[0], rtol=1e-4, atol=1e-4), (out1, ref[0])

    print("KERNEL_OK")
</pallas_src>

<mosaic_0001>
module attributes {stable_mosaic.version = 11 : i64} {
  func.func @_rbf_kernel(%arg0: i32, %arg1: memref<8x128xf32, #tpu.memory_space<vmem>>, %arg2: memref<128x8xf32, #tpu.memory_space<vmem>>, %arg3: memref<1x8xf32, #tpu.memory_space<vmem>>, %arg4: memref<1x8xf32, #tpu.memory_space<vmem>>, %arg5: memref<1x8xf32, #tpu.memory_space<vmem>>, %arg6: memref<1x1xf32, #tpu.memory_space<smem>>, %arg7: memref<8x1xf32, #tpu.memory_space<vmem>>) attributes {dimension_semantics = [#tpu.dimension_semantics<parallel>], iteration_bounds = array<i64: 2>, scalar_prefetch = 0 : i64, scratch_operands = 0 : i64, tpu.core_type = #tpu.core_type<tc>, window_params = [{transform_indices = @transform_0, window_bounds = array<i64: 8, 128>}, {pipeline_mode = #tpu.pipeline_mode<synchronous>, transform_indices = @transform_1, window_bounds = array<i64: 128, 8>}, {pipeline_mode = #tpu.pipeline_mode<synchronous>, transform_indices = @transform_2, window_bounds = array<i64: 1, 8>}, {pipeline_mode = #tpu.pipeline_mode<synchronous>, transform_indices = @transform_3, window_bounds = array<i64: 1, 8>}, {pipeline_mode = #tpu.pipeline_mode<synchronous>, transform_indices = @transform_4, window_bounds = array<i64: 1, 8>}, {transform_indices = @transform_5, window_bounds = array<i64: 1, 1>}, {transform_indices = @transform_6, window_bounds = array<i64: 8, 1>}]} {
    %c0 = arith.constant 0 : index
    %c0_0 = arith.constant 0 : index
    %0 = vector.load %arg1[%c0, %c0_0] : memref<8x128xf32, #tpu.memory_space<vmem>>, vector<8x128xf32>
    %c0_1 = arith.constant 0 : index
    %c0_2 = arith.constant 0 : index
    %1 = vector.load %arg2[%c0_1, %c0_2] : memref<128x8xf32, #tpu.memory_space<vmem>>, vector<128x8xf32>
    %cst = arith.constant dense<0.000000e+00> : vector<8x8xf32>
    %2 = tpu.matmul %0, %1, %cst {dimension_numbers = #tpu.dot_dimension_numbers<[1], [0], [0], [1], [0, 0, 1, 1], [], []>} : vector<8x128xf32>, vector<128x8xf32>, vector<8x8xf32> -> vector<8x8xf32>
    %3 = arith.mulf %0, %0 : vector<8x128xf32>
    %cst_3 = arith.constant dense<0.000000e+00> : vector<8xf32>
    %4 = vector.multi_reduction <add>, %3, %cst_3 [1] : vector<8x128xf32> to vector<8xf32>
    %5 = vector.shape_cast %4 : vector<8xf32> to vector<8x1xf32>
    %cst_4 = arith.constant 2.000000e+00 : f32
    %6 = vector.broadcast %cst_4 : f32 to vector<8x8xf32>
    %7 = arith.mulf %6, %2 : vector<8x8xf32>
    %8 = vector.broadcast %5 : vector<8x1xf32> to vector<8x8xf32>
    %9 = arith.subf %8, %7 : vector<8x8xf32>
    %c0_5 = arith.constant 0 : index
    %c0_6 = arith.constant 0 : index
    %10 = vector.load %arg3[%c0_5, %c0_6] : memref<1x8xf32, #tpu.memory_space<vmem>>, vector<1x8xf32>
    %11 = vector.broadcast %10 : vector<1x8xf32> to vector<8x8xf32>
    %12 = arith.addf %9, %11 : vector<8x8xf32>
    %cst_7 = arith.constant 0.000000e+00 : f32
    %13 = vector.broadcast %cst_7 : f32 to vector<8x8xf32>
    %14 = arith.maximumf %12, %13 : vector<8x8xf32>
    %15 = math.sqrt %14 : vector<8x8xf32>
    %c0_8 = arith.constant 0 : index
    %c0_9 = arith.constant 0 : index
    %16 = vector.load %arg4[%c0_8, %c0_9] : memref<1x8xf32, #tpu.memory_space<vmem>>, vector<1x8xf32>
    %17 = vector.broadcast %16 : vector<1x8xf32> to vector<8x8xf32>
    %18 = arith.mulf %17, %15 : vector<8x8xf32>
    %19 = math.exp %18 : vector<8x8xf32>
    %20 = math.absf %19 : vector<8x8xf32>
    %cst_10 = arith.constant 0x7F800000 : f32
    %21 = vector.broadcast %cst_10 : f32 to vector<8x8xf32>
    %22 = arith.cmpf oeq, %20, %21 : vector<8x8xf32>
    %cst_11 = arith.constant 0.000000e+00 : f32
    %23 = vector.broadcast %cst_11 : f32 to vector<8x8xf32>
    %24 = arith.select %22, %23, %19 : vector<8x8xi1>, vector<8x8xf32>
    %c0_12 = arith.constant 0 : index
    %c0_13 = arith.constant 0 : index
    %25 = vector.load %arg5[%c0_12, %c0_13] : memref<1x8xf32, #tpu.memory_space<vmem>>, vector<1x8xf32>
    %26 = vector.broadcast %25 : vector<1x8xf32> to vector<8x8xf32>
    %27 = arith.mulf %24, %26 : vector<8x8xf32>
    %cst_14 = arith.constant dense<0.000000e+00> : vector<8xf32>
    %28 = vector.multi_reduction <add>, %27, %cst_14 [1] : vector<8x8xf32> to vector<8xf32>
    %29 = vector.shape_cast %28 : vector<8xf32> to vector<8x1xf32>
    %c0_15 = arith.constant 0 : index
    %c0_16 = arith.constant 0 : index
    %30 = memref.load %arg6[%c0_15, %c0_16] : memref<1x1xf32, #tpu.memory_space<smem>>
    %31 = vector.broadcast %30 : f32 to vector<8x1xf32>
    %32 = arith.addf %29, %31 : vector<8x1xf32>
    %c0_17 = arith.constant 0 : index
    %c0_18 = arith.constant 0 : index
    %33 = vector.load %arg7[%c0_17, %c0_18] : memref<8x1xf32, #tpu.memory_space<vmem>>, vector<8x1xf32>
    tpu.vector_store %arg7[%c0_17, %c0_18], %32 {strides = array<i32>} : memref<8x1xf32, #tpu.memory_space<vmem>>, vector<8x1xf32>,
    return
  }
  func.func @transform_0(%arg0: i32) -> (i32, i32) {
    %c0_i32 = arith.constant 0 : i32
    %c0_i32_0 = arith.constant 0 : i32
    return %arg0, %c0_i32 : i32, i32
  }
  func.func @transform_1(%arg0: i32) -> (i32, i32) {
    %c0_i32 = arith.constant 0 : i32
    %c0_i32_0 = arith.constant 0 : i32
    %c0_i32_1 = arith.constant 0 : i32
    return %c0_i32, %c0_i32_0 : i32, i32
  }
  func.func @transform_2(%arg0: i32) -> (i32, i32) {
    %c0_i32 = arith.constant 0 : i32
    %c0_i32_0 = arith.constant 0 : i32
    %c0_i32_1 = arith.constant 0 : i32
    return %c0_i32, %c0_i32_0 : i32, i32
  }
  func.func @transform_3(%arg0: i32) -> (i32, i32) {
    %c0_i32 = arith.constant 0 : i32
    %c0_i32_0 = arith.constant 0 : i32
    %c0_i32_1 = arith.constant 0 : i32
    return %c0_i32, %c0_i32_0 : i32, i32
  }
  func.func @transform_4(%arg0: i32) -> (i32, i32) {
    %c0_i32 = arith.constant 0 : i32
    %c0_i32_0 = arith.constant 0 : i32
    %c0_i32_1 = arith.constant 0 : i32
    return %c0_i32, %c0_i32_0 : i32, i32
  }
  func.func @transform_5(%arg0: i32) -> (i32, i32) {
    %c0_i32 = arith.constant 0 : i32
    %c0_i32_0 = arith.constant 0 : i32
    %c0_i32_1 = arith.constant 0 : i32
    return %c0_i32, %c0_i32_0 : i32, i32
  }
  func.func @transform_6(%arg0: i32) -> (i32, i32) {
    %c0_i32 = arith.constant 0 : i32
    %c0_i32_0 = arith.constant 0 : i32
    return %arg0, %c0_i32 : i32, i32
  }
}

</mosaic_0001>

<bundles_post_ra>
// kernel: tpu_custom_call.1
= control target key start
LH: loop header
LB: loop body
LE: loop exit
PB: predicated region body
PF: predicated region fallthrough
CT: control target
= control target key end

     0   :  { %s591_s23 = smov 0   ;;  %s672_s0 = inlined_call_operand.vmem [shape: f32[16,128], index: 0, kind: input, shape index: {}]   ;;  %s673_s1 = inlined_call_operand.vmem [shape: f32[128,8], index: 1, kind: input, shape index: {}]   ;;  %s674_s2 = inlined_call_operand.vmem [shape: f32[1,8], index: 2, kind: input, shape index: {}]   ;;  %s675_s3 = inlined_call_operand.vmem [shape: f32[1,8], index: 3, kind: input, shape index: {}]   ;;  %s676_s4 = inlined_call_operand.vmem [shape: f32[1,8], index: 4, kind: input, shape index: {}]   ;;  %s677_s5 = inlined_call_operand.<no memory space> [shape: f32[1,1], index: 5, kind: input, shape index: {}]   ;;  %s678_s6 = inlined_call_operand.vmem [shape: f32[16,1], index: 6, kind: output, shape index: {}]  }
   0x1   :  { %11 = sst [smem:[#allocation2]] %s677_s5 }
   0x2 LB: > { %s439_s24 = sadd.s32 4294967295, %s548_s23   ;;  %p443_p0 = scmp.ge.s32.totalorder %s548_s23, 1  ;;  %s548_s23 = sphi %s591_s23, %s17_s23  }
   0x3   : > { %p212_p1 = scmp.lt.s32.totalorder %s548_s23, 3 }
   0x5   : > { %p213_p2 = pnand %p443_p0, %p212_p1 }
   0x6   : > { %v249_v0 = vld [vmem:[%s673_s1] sm:$0xff] (!%p213_p2)  ;;  %v250_v1 = vld [vmem:[%s673_s1 + $0x8] sm:$0xff] (!%p213_p2)  ;;  %v251_v2 = vld [vmem:[%s673_s1 + $0x10] sm:$0xff] (!%p213_p2)  ;;  %v550_v3 = vmov (!%p213_p2), 0.0|0.0   ;;  %vm551_vm0 = vmmov (!%p213_p2), 0   ;;  %v552_v6 = vmov (!%p213_p2), 0.0  }
   0x7   : > { %216 = sbr.rel (%p213_p2) target bundleno = 442 (0x1ba), region = 44  ;;  %503 = vmatprep.subr.bf16.mxu0 (!%p213_p2), %v550_v3  ;;  %v504_v4 = vpack.c.bf16 (!%p213_p2), %v250_v1, %v249_v0  ;;  %v252_v5 = vld [vmem:[%s673_s1 + $0x18] sm:$0xff] (!%p213_p2)  ;;  %500 = vmatprep.mubr.msk.f32.mxu0 (!%p213_p2), %vm551_vm0, %v552_v6  ;;  %p240_p3 = scmp.lt.s32.totalorder (!%p213_p2), %s439_s24, 1  ;;  %v253_v8 = vld [vmem:[%s673_s1 + $0x20] sm:$0xff] (!%p213_p2)  ;;  %v254_v9 = vld [vmem:[%s673_s1 + $0x28] sm:$0xff] (!%p213_p2)  ;;  %vm377_vm4 = vcmask (!%p213_p2), 64512  }
   0x8   : > { %v507_v7 = vpack.c.bf16 (!%p213_p2), %v252_v5, %v251_v2  ;;  %v510_v10 = vpack.c.bf16 (!%p213_p2), %v254_v9, %v253_v8  ;;  %v255_v12 = vld [vmem:[%s673_s1 + $0x30] sm:$0xff] (!%p213_p2)  ;;  %v256_v13 = vld [vmem:[%s673_s1 + $0x38] sm:$0xff] (!%p213_p2)  ;;  %v257_v16 = vld [vmem:[%s673_s1 + $0x40] sm:$0xff] (!%p213_p2)  ;;  %s381_s20 = sld [smem:[#allocation2]] (!%p213_p2)  ;;  %vm384_vm5 = vcmask (!%p213_p2), 7168  }
   0x9   : > { %505 = vmatpush3.bf16.msra.mxu0 (!%p213_p2), %v504_v4  ;;  %v513_v15 = vpack.c.bf16 (!%p213_p2), %v256_v13, %v255_v12  ;;  %v258_v17 = vld [vmem:[%s673_s1 + $0x48] sm:$0xff] (!%p213_p2)  ;;  %v259_v19 = vld [vmem:[%s673_s1 + $0x50] sm:$0xff] (!%p213_p2)  ;;  %v260_v20 = vld [vmem:[%s673_s1 + $0x58] sm:$0xff] (!%p213_p2) }
   0xa   : > { %506 = vmatprep.subr.bf16.mxu0 (!%p213_p2), %v550_v3  ;;  %v516_v18 = vpack.c.bf16 (!%p213_p2), %v258_v17, %v257_v16  ;;  %v519_v21 = vpack.c.bf16 (!%p213_p2), %v260_v20, %v259_v19  ;;  %v261_v22 = vld [vmem:[%s673_s1 + $0x60] sm:$0xff] (!%p213_p2)  ;;  %v262_v23 = vld [vmem:[%s673_s1 + $0x68] sm:$0xff] (!%p213_p2)  ;;  %v263_v25 = vld [vmem:[%s673_s1 + $0x70] sm:$0xff] (!%p213_p2) }
   0xb   : > { %v522_v24 = vpack.c.bf16 (!%p213_p2), %v262_v23, %v261_v22  ;;  %v264_v26 = vld [vmem:[%s673_s1 + $0x78] sm:$0xff] (!%p213_p2)  ;;  %v446_v32 = vld [vmem:[%s674_s2] ss:$0 sm:$0xff] (!%p213_p2) }
   0xc   : > { %v525_v27 = vpack.c.bf16 (!%p213_p2), %v264_v26, %v263_v25  ;;  %v447_v39 = vld [vmem:[%s675_s3] ss:$0 sm:$0xff] (!%p213_p2) }
   0xd   : > { %508 = vmatpush3.bf16.msra.mxu0 (!%p213_p2), %v507_v7  ;;  %v448_v46 = vld [vmem:[%s676_s4] ss:$0 sm:$0xff] (!%p213_p2) }
   0xe   : > { %s680_s24 = smov (!%p240_p3, %s439_s24), 1  ;;  %509 = vmatprep.subr.bf16.mxu0 %v550_v3  ;;  %v382_v50 = vstv %s381_s20 }
   0xf   : > { %s444_s12 = sshll.u32 %s680_s24, 3 }
  0x10   : > { %s243_s15 = scalar_lea.vmem %s672_s0, %s444_s12  ;;  %s247_s25 = scalar_lea.vmem %s678_s6, %s444_s12 }
  0x11   : > { %v248_v11 = vld [vmem:[%s243_s15] sm:$0xff]  ;;  %511 = vmatpush3.bf16.msra.mxu0 %v510_v10 }
  0x12   : > { %v335_v14 = vmul.f32 %v248_v11, %v248_v11  ;;  %512 = vmatprep.subr.bf16.mxu0 %v550_v3 }
  0x14   : > { %336 = vadd.xlane.f32.xlu0 %v335_v14 }
  0x15   : > { %514 = vmatpush3.bf16.msra.mxu0 %v513_v15 }
  0x16   : > { %515 = vmatprep.subr.bf16.mxu0 %v550_v3 }
  0x19   : > { %517 = vmatpush3.bf16.msra.mxu0 %v516_v18 }
  0x1a   : > { %518 = vmatprep.subr.bf16.mxu0 %v550_v3 }
  0x1d   : > { %520 = vmatpush3.bf16.msra.mxu0 %v519_v21 }
  0x1e   : > { %521 = vmatprep.subr.bf16.mxu0 %v550_v3 }
  0x21   : > { %523 = vmatpush3.bf16.msra.mxu0 %v522_v24 }
  0x22   : > { %524 = vmatprep.subr.bf16.mxu0 %v550_v3 }
  0x25   : > { %526 = vmatpush3.bf16.msra.mxu0 %v525_v27 }
  0x28   : > { %501 = vmatmul.mubr.f32.vlgmr.msra.gmra.mrb[0].mxu0 %v248_v11 }
  0xa1   : > { %v337_v29 = vpop.xlane.xlu0 %336 }
  0xfb   : > { %v331_v28 = vpop.f32.mrb[0].mxu0 }
  0xfc   : > { %v338_v30 = vmul.f32 2.0, %v331_v28  ;;  %v502_v31 = vpop.f32.mrb[1].mxu0 }
  0xfe   : > { %v339_v33 = vsub.f32 %v337_v29, %v338_v30 }
 0x100   : > { %v347_v34 = vadd.f32 %v446_v32, %v339_v33 }
 0x102   : > { %v348_v35 = vmax.f32 %v347_v34, 0.0 }
 0x104   : > { %538 = vrsqrt.f32 %v348_v35  ;;  %vm351_vm1 = vcmp.eq.f32.partialorder %v348_v35, inf  ;;  %v354_v38 = vand.u32 2147483648, %v348_v35  ;;  %vm353_vm2 = vcmp.eq.f32.partialorder %v348_v35, 0.0 }
 0x10e   : > { %v539_v36 = vpop.eup %538 }
 0x10f   : > { %v350_v37 = vmul.f32 %v539_v36, %v348_v35 }
 0x111   : > { %v352_v40 = vsel %vm351_vm1, %v348_v35, %v350_v37 }
 0x112   : > { %v355_v41 = vsel %vm353_vm2, %v354_v38, %v352_v40 }
 0x113   : > { %v363_v42 = vmul.f32 %v447_v39, %v355_v41 }
 0x115   : > { %v364_v43 = vmul.f32 1.442695, %v363_v42 }
 0x117   : > { %540 = vpow2.f32 %v364_v43 }
 0x121   : > { %v541_v44 = vpop.eup %540 }
 0x122   : > { %v366_v45 = vand.u32 2147483647, %v541_v44 }
 0x124   : > { %vm367_vm3 = vcmp.eq.f32.partialorder %v366_v45, inf }
 0x125   : > { %v368_v47 = vsel %vm367_vm3, 0.0, %v541_v44 }
 0x126   : > { %v376_v48 = vmul.f32 %v448_v46, %v368_v47 }
 0x128   : > { %v378_v49 = vsel %vm377_vm4, %v376_v48, 0.0 }
 0x129   : > { %379 = vadd.xlane.f32.xlu0 %v378_v49 }
 0x1b6   : > { %v380_v51 = vpop.xlane.xlu0 %379 }
 0x1b7   : > { %v383_v52 = vadd.f32 %v382_v50, %v380_v51 }
 0x1b9   : > { %385 = vst.msk [vmem:[%s247_s25] sm:$0xff] %vm384_vm5, %v383_v52 }
 0x1ba PF: > { %s17_s23 = sadd.s32 1, %s548_s23  }
 0x1bb   : > { %p14_p4 = scmp.ge.s32.totalorder %s17_s23, 4  }
 0x1bd   :  { %16 = sbr.rel (!%p14_p4) target bundleno = 2 (0x2), region = 74 }

</bundles_post_ra>
